<compile_context>
chip_gen: v7x
topology: tpu7x:2x2x1
jax: 0.10.0
libtpu: 0.0.40
codegen_flags: <defaults>
</compile_context>

<pallas_src>
import jax
import jax.numpy as jnp
from jax.experimental import pallas as pl
from jax.experimental.pallas import tpu as pltpu


NUM_FEATURES = (8, 32, 64, 256)
RESHAPE = (1, 16, 16)
NEG_SLOPE = 0.01            # torch.nn.LeakyReLU default
DEFAULT_TB = 2048           # max batch-tile rows (multiple of 8 f32 sublanes; safe on v5e/v6e/v7x)
MIN_GRID_STEPS = 4          # aim for a multi-step grid so the pipeline has work to overlap


def _round_up(n, m):
    return ((n + m - 1) // m) * m


def _leaky_relu(x):
    return jnp.where(x > 0, x, NEG_SLOPE * x)


def dense_decoder_kernel(x_ref,
                         w0_ref, b0_ref,
                         w1_ref, b1_ref,
                         w2_ref, b2_ref,
                         out_ref):
    """Fused MLP decoder on one batch tile: (Linear+leaky_relu) x2 -> Linear (logits)."""
    x = x_ref[...].astype(jnp.float32)

    # DenseBlock layer 1: 8 -> 32, leaky_relu
    h = jnp.dot(x, w0_ref[...], preferred_element_type=jnp.float32) + b0_ref[...]
    h = _leaky_relu(h)

    # DenseBlock layer 2 (last_activation='same', normalize_last=True): 32 -> 64, leaky_relu
    h = jnp.dot(h, w1_ref[...], preferred_element_type=jnp.float32) + b1_ref[...]
    h = _leaky_relu(h)

    # bernoulli_logits head: 64 -> 256, no activation.
    # Single lane-dense (TB, 256) store; the only dtype cast happens here.
    logits = jnp.dot(h, w2_ref[...], preferred_element_type=jnp.float32) + b2_ref[...]
    out_ref[...] = logits.astype(out_ref.dtype)


def _pick_tb(batch, requested=None):
    """Batch tile: full-extent for tiny batches, else a multiple of 8 giving >= MIN_GRID_STEPS steps."""
    if batch <= 8:
        return batch                                  # full-extent block (allowed even if < 8 rows)
    if requested is None:
        requested = min(DEFAULT_TB, _round_up(pl.cdiv(batch, MIN_GRID_STEPS), 8))
    tb = min(requested, batch)
    if tb != batch:
        tb = max(8, (tb // 8) * 8)                    # sublane-aligned when not a full-extent block
    return tb


def _dimension_semantics():
    """CORE_PARALLEL on v7x (2 TensorCores/chip); plain 'parallel' on single-TC chips."""
    try:
        kind = jax.devices()[0].device_kind.lower()
    except Exception:
        kind = ""
    if "v7" in kind and hasattr(pltpu, "CORE_PARALLEL"):
        return (pltpu.CORE_PARALLEL,)
    return ("parallel",)


def _decoder_call(x, params, tb, out_dtype, dim_semantics):
    (w0, b0), (w1, b1), (w2, b2) = params
    batch, in_dim = x.shape
    out_dim = w2.shape[1]
    grid = (pl.cdiv(batch, tb),)                      # partial last block handled by Pallas masking

    # Weights/biases: full-array blocks with constant index_map -> DMA'd once, VMEM-resident.
    def resident(a):
        return pl.BlockSpec(a.shape, lambda i, _nd=a.ndim: (0,) * _nd)

    d0, d1, d2, d3 = NUM_FEATURES
    weight_bytes = sum(int(a.size) * a.dtype.itemsize for p in params for a in p)
    out_itemsize = jnp.dtype(out_dtype).itemsize
    cost = pl.CostEstimate(
        flops=2 * batch * (d0 * d1 + d1 * d2 + d2 * d3),
        transcendentals=0,
        bytes_accessed=batch * (in_dim * x.dtype.itemsize + out_dim * out_itemsize) + weight_bytes,
    )

    return pl.pallas_call(
        dense_decoder_kernel,
        out_shape=jax.ShapeDtypeStruct((batch, out_dim), out_dtype),
        grid=grid,
        in_specs=[
            pl.BlockSpec((tb, in_dim), lambda i: (i, 0)),
            resident(w0), resident(b0),
            resident(w1), resident(b1),
            resident(w2), resident(b2),
        ],
        out_specs=pl.BlockSpec((tb, out_dim), lambda i: (i, 0)),
        compiler_params=pltpu.CompilerParams(
            dimension_semantics=dim_semantics,
            vmem_limit_bytes=32 * 1024 * 1024,
        ),
        cost_estimate=cost,
    )(x, w0, b0, w1, b1, w2, b2)


def dense_decoder_forward(x, params, *, tb=None, out_dtype=jnp.bfloat16):
    """x: (B, num_features[0]) float32 -> logits (B, *RESHAPE).

    out_dtype defaults to bfloat16 (f32 accumulation in-kernel, cast only at the final
    store) since the kernel is HBM-writeback bound; pass jnp.float32 for the exact
    PyTorch output dtype.
    """
    batch = x.shape[0]
    tile = _pick_tb(batch, tb)
    dim_sem = _dimension_semantics()
    try:
        logits = _decoder_call(x, params, tile, out_dtype, dim_sem)
    except Exception:
        if dim_sem == ("parallel",):
            raise
        # Fall back if core-parallel lowering is unavailable on this Mosaic build.
        logits = _decoder_call(x, params, tile, out_dtype, ("parallel",))

    # PyTorch: logits.view(-1, *self.reshape) — done on the already-narrow dtype.
    return logits.reshape(-1, *RESHAPE)


def init_params(key):
    """Deterministic init mimicking torch.nn.Linear default (U[-1/sqrt(fan_in), +1/sqrt(fan_in)])."""
    params = []
    dims = NUM_FEATURES
    for i in range(len(dims) - 1):
        fan_in, fan_out = dims[i], dims[i + 1]
        key, kw, kb = jax.random.split(key, 3)
        bound = 1.0 / jnp.sqrt(jnp.float32(fan_in))
        w = jax.random.uniform(kw, (fan_in, fan_out), jnp.float32, -bound, bound)
        # biases kept 2D (1, fan_out) for clean TPU broadcasting inside the kernel
        b = jax.random.uniform(kb, (1, fan_out), jnp.float32, -bound, bound)
        params.append((w, b))
    return params


if __name__ == "__main__":
    key = jax.random.PRNGKey(0)
    key, kx, kx2 = jax.random.split(key, 3)

    params = init_params(key)
    (w0, b0), (w1, b1), (w2, b2) = params

    def reference(inp):
        h = inp @ w0 + b0
        h = jnp.where(h > 0, h, NEG_SLOPE * h)
        h = h @ w1 + b1
        h = jnp.where(h > 0, h, NEG_SLOPE * h)
        return (h @ w2 + b2).reshape(-1, *RESHAPE)

    batch = 2
    x = jax.random.normal(kx, (batch, NUM_FEATURES[0]), jnp.float32)

    # Default path: bf16 logits (f32 accumulation in-kernel).
    logits = dense_decoder_forward(x, params)
    jax.block_until_ready(logits)
    assert logits.shape == (batch, *RESHAPE), logits.shape
    assert logits.dtype == jnp.bfloat16, logits.dtype
    ref = reference(x)
    # Tolerance covers the bf16 output cast plus MXU default-precision f32 matmul passes.
    assert jnp.allclose(logits.astype(jnp.float32), ref, atol=3e-2, rtol=3e-2)

    # f32 output path (exact PyTorch output dtype).
    logits_f32 = dense_decoder_forward(x, params, out_dtype=jnp.float32)
    jax.block_until_ready(logits_f32)
    assert logits_f32.shape == (batch, *RESHAPE)
    assert logits_f32.dtype == jnp.float32
    assert jnp.allclose(logits_f32, ref, atol=2e-2, rtol=2e-2)

    # Non-tile-multiple batch: exercises the multi-step grid + masked partial last block
    # (no host-side pad of x, no output slice).
    xb = jax.random.normal(kx2, (100, NUM_FEATURES[0]), jnp.float32)
    logits_b = dense_decoder_forward(xb, params, out_dtype=jnp.float32)
    jax.block_until_ready(logits_b)
    assert logits_b.shape == (100, *RESHAPE), logits_b.shape
    assert jnp.allclose(logits_b, reference(xb), atol=2e-2, rtol=2e-2)

    print("KERNEL_OK")
</pallas_src>

<mosaic_0001>
module attributes {stable_mosaic.version = 11 : i64} {
  func.func @dense_decoder_kernel(%arg0: i32, %arg1: memref<2x8xf32, #tpu.memory_space<vmem>>, %arg2: memref<8x32xf32, #tpu.memory_space<vmem>>, %arg3: memref<1x32xf32, #tpu.memory_space<vmem>>, %arg4: memref<32x64xf32, #tpu.memory_space<vmem>>, %arg5: memref<1x64xf32, #tpu.memory_space<vmem>>, %arg6: memref<64x256xf32, #tpu.memory_space<vmem>>, %arg7: memref<1x256xf32, #tpu.memory_space<vmem>>, %arg8: memref<2x256xbf16, #tpu.memory_space<vmem>>) attributes {dimension_semantics = [#tpu.dimension_semantics<parallel>], iteration_bounds = array<i64: 1>, scalar_prefetch = 0 : i64, scratch_operands = 0 : i64, tpu.core_type = #tpu.core_type<tc>, window_params = [{transform_indices = @transform_0, window_bounds = array<i64: 2, 8>}, {pipeline_mode = #tpu.pipeline_mode<synchronous>, transform_indices = @transform_1, window_bounds = array<i64: 8, 32>}, {pipeline_mode = #tpu.pipeline_mode<synchronous>, transform_indices = @transform_2, window_bounds = array<i64: 1, 32>}, {pipeline_mode = #tpu.pipeline_mode<synchronous>, transform_indices = @transform_3, window_bounds = array<i64: 32, 64>}, {pipeline_mode = #tpu.pipeline_mode<synchronous>, transform_indices = @transform_4, window_bounds = array<i64: 1, 64>}, {pipeline_mode = #tpu.pipeline_mode<synchronous>, transform_indices = @transform_5, window_bounds = array<i64: 64, 256>}, {pipeline_mode = #tpu.pipeline_mode<synchronous>, transform_indices = @transform_6, window_bounds = array<i64: 1, 256>}, {transform_indices = @transform_7, window_bounds = array<i64: 2, 256>}]} {
    %c0 = arith.constant 0 : index
    %c0_0 = arith.constant 0 : index
    %0 = vector.load %arg1[%c0, %c0_0] : memref<2x8xf32, #tpu.memory_space<vmem>>, vector<2x8xf32>
    %c0_1 = arith.constant 0 : index
    %c0_2 = arith.constant 0 : index
    %1 = vector.load %arg2[%c0_1, %c0_2] : memref<8x32xf32, #tpu.memory_space<vmem>>, vector<8x32xf32>
    %cst = arith.constant dense<0.000000e+00> : vector<2x32xf32>
    %2 = tpu.matmul %0, %1, %cst {dimension_numbers = #tpu.dot_dimension_numbers<[1], [0], [0], [1], [0, 0, 1, 1], [], []>} : vector<2x8xf32>, vector<8x32xf32>, vector<2x32xf32> -> vector<2x32xf32>
    %c0_3 = arith.constant 0 : index
    %c0_4 = arith.constant 0 : index
    %3 = vector.load %arg3[%c0_3, %c0_4] : memref<1x32xf32, #tpu.memory_space<vmem>>, vector<1x32xf32>
    %4 = vector.broadcast %3 : vector<1x32xf32> to vector<2x32xf32>
    %5 = arith.addf %2, %4 : vector<2x32xf32>
    %cst_5 = arith.constant 0.000000e+00 : f32
    %6 = vector.broadcast %cst_5 : f32 to vector<2x32xf32>
    %7 = arith.cmpf ogt, %5, %6 : vector<2x32xf32>
    %cst_6 = arith.constant 0.00999999977 : f32
    %8 = vector.broadcast %cst_6 : f32 to vector<2x32xf32>
    %9 = arith.mulf %8, %5 : vector<2x32xf32>
    %10 = arith.select %7, %5, %9 : vector<2x32xi1>, vector<2x32xf32>
    %c0_7 = arith.constant 0 : index
    %c0_8 = arith.constant 0 : index
    %11 = vector.load %arg4[%c0_7, %c0_8] : memref<32x64xf32, #tpu.memory_space<vmem>>, vector<32x64xf32>
    %cst_9 = arith.constant dense<0.000000e+00> : vector<2x64xf32>
    %12 = tpu.matmul %10, %11, %cst_9 {dimension_numbers = #tpu.dot_dimension_numbers<[1], [0], [0], [1], [0, 0, 1, 1], [], []>} : vector<2x32xf32>, vector<32x64xf32>, vector<2x64xf32> -> vector<2x64xf32>
    %c0_10 = arith.constant 0 : index
    %c0_11 = arith.constant 0 : index
    %13 = vector.load %arg5[%c0_10, %c0_11] : memref<1x64xf32, #tpu.memory_space<vmem>>, vector<1x64xf32>
    %14 = vector.broadcast %13 : vector<1x64xf32> to vector<2x64xf32>
    %15 = arith.addf %12, %14 : vector<2x64xf32>
    %cst_12 = arith.constant 0.000000e+00 : f32
    %16 = vector.broadcast %cst_12 : f32 to vector<2x64xf32>
    %17 = arith.cmpf ogt, %15, %16 : vector<2x64xf32>
    %cst_13 = arith.constant 0.00999999977 : f32
    %18 = vector.broadcast %cst_13 : f32 to vector<2x64xf32>
    %19 = arith.mulf %18, %15 : vector<2x64xf32>
    %20 = arith.select %17, %15, %19 : vector<2x64xi1>, vector<2x64xf32>
    %c0_14 = arith.constant 0 : index
    %c0_15 = arith.constant 0 : index
    %21 = vector.load %arg6[%c0_14, %c0_15] : memref<64x256xf32, #tpu.memory_space<vmem>>, vector<64x256xf32>
    %cst_16 = arith.constant dense<0.000000e+00> : vector<2x256xf32>
    %22 = tpu.matmul %20, %21, %cst_16 {dimension_numbers = #tpu.dot_dimension_numbers<[1], [0], [0], [1], [0, 0, 1, 1], [], []>} : vector<2x64xf32>, vector<64x256xf32>, vector<2x256xf32> -> vector<2x256xf32>
    %c0_17 = arith.constant 0 : index
    %c0_18 = arith.constant 0 : index
    %23 = vector.load %arg7[%c0_17, %c0_18] : memref<1x256xf32, #tpu.memory_space<vmem>>, vector<1x256xf32>
    %24 = vector.broadcast %23 : vector<1x256xf32> to vector<2x256xf32>
    %25 = arith.addf %22, %24 : vector<2x256xf32>
    %26 = arith.truncf %25 : vector<2x256xf32> to vector<2x256xbf16>
    %c0_19 = arith.constant 0 : index
    %c0_20 = arith.constant 0 : index
    %27 = vector.load %arg8[%c0_19, %c0_20] : memref<2x256xbf16, #tpu.memory_space<vmem>>, vector<2x256xbf16>
    tpu.vector_store %arg8[%c0_19, %c0_20], %26 {strides = array<i32>} : memref<2x256xbf16, #tpu.memory_space<vmem>>, vector<2x256xbf16>,
    return
  }
  func.func @transform_0(%arg0: i32) -> (i32, i32) {
    %c0_i32 = arith.constant 0 : i32
    %c0_i32_0 = arith.constant 0 : i32
    return %arg0, %c0_i32 : i32, i32
  }
  func.func @transform_1(%arg0: i32) -> (i32, i32) {
    %c0_i32 = arith.constant 0 : i32
    %c0_i32_0 = arith.constant 0 : i32
    %c0_i32_1 = arith.constant 0 : i32
    return %c0_i32, %c0_i32_0 : i32, i32
  }
  func.func @transform_2(%arg0: i32) -> (i32, i32) {
    %c0_i32 = arith.constant 0 : i32
    %c0_i32_0 = arith.constant 0 : i32
    %c0_i32_1 = arith.constant 0 : i32
    return %c0_i32, %c0_i32_0 : i32, i32
  }
  func.func @transform_3(%arg0: i32) -> (i32, i32) {
    %c0_i32 = arith.constant 0 : i32
    %c0_i32_0 = arith.constant 0 : i32
    %c0_i32_1 = arith.constant 0 : i32
    return %c0_i32, %c0_i32_0 : i32, i32
  }
  func.func @transform_4(%arg0: i32) -> (i32, i32) {
    %c0_i32 = arith.constant 0 : i32
    %c0_i32_0 = arith.constant 0 : i32
    %c0_i32_1 = arith.constant 0 : i32
    return %c0_i32, %c0_i32_0 : i32, i32
  }
  func.func @transform_5(%arg0: i32) -> (i32, i32) {
    %c0_i32 = arith.constant 0 : i32
    %c0_i32_0 = arith.constant 0 : i32
    %c0_i32_1 = arith.constant 0 : i32
    return %c0_i32, %c0_i32_0 : i32, i32
  }
  func.func @transform_6(%arg0: i32) -> (i32, i32) {
    %c0_i32 = arith.constant 0 : i32
    %c0_i32_0 = arith.constant 0 : i32
    %c0_i32_1 = arith.constant 0 : i32
    return %c0_i32, %c0_i32_0 : i32, i32
  }
  func.func @transform_7(%arg0: i32) -> (i32, i32) {
    %c0_i32 = arith.constant 0 : i32
    %c0_i32_0 = arith.constant 0 : i32
    return %arg0, %c0_i32 : i32, i32
  }
}

</mosaic_0001>

<bundles_post_ra>
// kernel: tpu_custom_call.1
= control target key start
LH: loop header
LB: loop body
LE: loop exit
PB: predicated region body
PF: predicated region fallthrough
CT: control target
= control target key end

     0   :  { %12 = vsyncpa [#allocation3], 0  ;;  %s698_s0 = inlined_call_operand.hbm [shape: f32[2,8], index: 0, kind: input, shape index: {}]   ;;  %s699_s1 = inlined_call_operand.hbm [shape: f32[8,32], index: 1, kind: input, shape index: {}]   ;;  %s700_s2 = inlined_call_operand.vmem [shape: f32[1,32], index: 2, kind: input, shape index: {}]   ;;  %s701_s3 = inlined_call_operand.hbm [shape: f32[32,64], index: 3, kind: input, shape index: {}]   ;;  %s702_s4 = inlined_call_operand.vmem [shape: f32[1,64], index: 4, kind: input, shape index: {}]   ;;  %s703_s5 = inlined_call_operand.hbm [shape: f32[64,256], index: 5, kind: input, shape index: {}]   ;;  %s704_s6 = inlined_call_operand.vmem [shape: f32[1,256], index: 6, kind: input, shape index: {}]   ;;  %s705_s7 = inlined_call_operand.hbm [shape: bf16[2,256], index: 7, kind: output, shape index: {}]  }
   0x1   :  { %13 = vsyncpa [#allocation6], 0 }
   0x2   :  { %14 = vsyncpa [#allocation9], 0 }
   0x3   :  { %15 = vsyncpa [#allocation4], 0  ;;  %s576_s24 = smov [#allocation5]   ;;  %s577_s26 = smov [#allocation2]  }
   0x4   :  { %s32_s25 = sshll.u32 %s576_s24, 4  ;;  %s22_s27 = sshll.u32 %s577_s26, 4  ;;  %s33_s25 = int_to_ptr.vmem [resolvable:$true] %s32_s25  ;;  %s23_s27 = int_to_ptr.vmem [resolvable:$true] %s22_s27 }
   0x5   :  { %s458_s30 = scalar_lea.hbm %s699_s1, 128 }
   0x6   :  { %p459_p0 = scmp.ne.s32.totalorder %s699_s1, %s458_s30  ;;  %p462_p1 = scmp.lt.u32.totalorder %s458_s30, %s699_s1 }
   0x8   :  { %p464_p2 = pnand %p462_p1, %p459_p0 }
   0xa   :  { %467 = shalt.err (!%p464_p2)
}
   0xb   :  { %s468_s12 = scalar_lea.vmem %s33_s25, 128  ;;  %p473_p4 = scmp.lt.s32.totalorder %s33_s25, %s33_s25 }
   0xc   :  { %p469_p3 = scmp.ne.s32.totalorder %s33_s25, %s468_s12  ;;  %p474_p5 = scmp.lt.s32.totalorder %s468_s12, %s468_s12 }
   0xe   :  { %p475_p6 = por %p474_p5, %p473_p4 }
  0x10   :  { %p476_p7 = pnand %p475_p6, %p469_p3 }
  0x12   :  { %479 = shalt.err (!%p476_p7)
}
  0x13   :  { %35 = dma.hbm_to_vmem [thread:$0]  %s699_s1, 128, %s33_s25, [#allocation6]  }
  0x14   :  { %s480_s17 = scalar_lea.hbm %s698_s0, 32 }
  0x15   :  { %p481_p8 = scmp.ne.s32.totalorder %s698_s0, %s480_s17  ;;  %p484_p9 = scmp.lt.u32.totalorder %s480_s17, %s698_s0 }
  0x17   :  { %p486_p10 = pnand %p484_p9, %p481_p8 }
  0x19   :  { %489 = shalt.err (!%p486_p10)
}
  0x1a   :  { %s490_s22 = scalar_lea.vmem %s23_s27, 32  ;;  %p495_p12 = scmp.lt.s32.totalorder %s23_s27, %s23_s27 }
  0x1b   :  { %p491_p11 = scmp.ne.s32.totalorder %s23_s27, %s490_s22  ;;  %p496_p13 = scmp.lt.s32.totalorder %s490_s22, %s490_s22 }
  0x1d   :  { %p497_p0 = por %p496_p13, %p495_p12 }
  0x1f   :  { %p498_p1 = pnand %p497_p0, %p491_p11 }
  0x21   :  { %501 = shalt.err (!%p498_p1)
}
  0x22   :  { %25 = dma.hbm_to_vmem [thread:$0]  %s698_s0, 32, %s23_s27, [#allocation3]  }
  0x23   :  { %s578_s24 = smov [#allocation7]   ;;  %s502_s29 = scalar_lea.hbm %s701_s3, 512 }
  0x24   :  { %s43_s25 = sshll.u32 %s578_s24, 4  ;;  %p503_p2 = scmp.ne.s32.totalorder %s701_s3, %s502_s29  ;;  %s44_s25 = int_to_ptr.vmem [resolvable:$true] %s43_s25 }
  0x25   :  { %p506_p3 = scmp.lt.u32.totalorder %s502_s29, %s701_s3 }
  0x27   :  { %p508_p4 = pnand %p506_p3, %p503_p2 }
  0x29   :  { %511 = shalt.err (!%p508_p4)
}
  0x2a   :  { %s512_s11 = scalar_lea.vmem %s44_s25, 512  ;;  %p517_p6 = scmp.lt.s32.totalorder %s44_s25, %s44_s25 }
  0x2b   :  { %p513_p5 = scmp.ne.s32.totalorder %s44_s25, %s512_s11  ;;  %p518_p7 = scmp.lt.s32.totalorder %s512_s11, %s512_s11 }
  0x2d   :  { %p519_p8 = por %p518_p7, %p517_p6 }
  0x2f   :  { %p520_p9 = pnand %p519_p8, %p513_p5 }
  0x31   :  { %523 = shalt.err (!%p520_p9)
}
  0x32   :  { %s579_s0 = smov 128   ;;  %s580_s27 = smov 8  }
  0x33   :  { %49 = dma.hbm_to_vmem [thread:$0]  %s701_s3, 512, %s44_s25, [#allocation6], %s579_s0, %s579_s0, %s580_s27  }
  0x34   :  { %s581_s14 = smov [#allocation8]   ;;  %s524_s18 = scalar_lea.hbm %s703_s5, 2048 }
  0x35   :  { %s57_s15 = sshll.u32 %s581_s14, 4  ;;  %p525_p10 = scmp.ne.s32.totalorder %s703_s5, %s524_s18  ;;  %s58_s15 = int_to_ptr.vmem [resolvable:$true] %s57_s15 }
  0x36   :  { %p528_p11 = scmp.lt.u32.totalorder %s524_s18, %s703_s5 }
  0x38   :  { %p530_p12 = pnand %p528_p11, %p525_p10 }
  0x3a   :  { %533 = shalt.err (!%p530_p12)
}
  0x3b   :  { %s534_s1 = scalar_lea.vmem %s58_s15, 2048  ;;  %p539_p0 = scmp.lt.s32.totalorder %s58_s15, %s58_s15 }
  0x3c   :  { %p535_p13 = scmp.ne.s32.totalorder %s58_s15, %s534_s1  ;;  %p540_p1 = scmp.lt.s32.totalorder %s534_s1, %s534_s1 }
  0x3e   :  { %p541_p2 = por %p540_p1, %p539_p0 }
  0x40   :  { %p542_p3 = pnand %p541_p2, %p535_p13 }
  0x42   :  { %545 = shalt.err (!%p542_p3)
}
  0x43   :  { %s582_s3 = smov 256   ;;  %s583_s23 = smov 16  }
  0x44   :  { %63 = dma.hbm_to_vmem [thread:$0]  %s703_s5, 2048, %s58_s15, [#allocation9], %s582_s3, %s582_s3, %s583_s23  }
  0x45   :  { %568 = dma.done.wait [#allocation3], 32  }
  0x46   :  { %569 = vsyncadd [#allocation3], 4294967264 }
  0x47   :  { %570 = dma.done.wait [#allocation6], 640  }
  0x48   :  { %571 = vsyncadd [#allocation6], 4294966656 }
  0x49   :  { %572 = dma.done.wait [#allocation9], 2048  }
  0x4a   :  { %573 = vsyncadd [#allocation9], 4294965248  ;;  %v584_v0 = vmov 0.0   ;;  %vm585_vm0 = vmmov 0   ;;  %vm87_vm1 = vcmask 64512   ;;  %v79_v1 = vld [vmem:[#allocation5] sm:$0xff]  ;;  %v270_v46 = vlaneseq }
  0x4b   :  { %407 = vmatprep.subr.mxu1 %v584_v0  ;;  %409 = vmatprep.mubr.msk.f32.mxu1 %vm585_vm0, %v584_v0  ;;  %v78_v2 = vld [vmem:[#allocation2] sm:$0x3]  ;;  %v164_v3 = vld [vmem:[#allocation7] sm:$0xff]  ;;  %v165_v4 = vld [vmem:[#allocation7 + $0x8] sm:$0xff]  ;;  %v586_v5 = vmov 0.0|0.0   ;;  %vm175_vm3 = vcmask 261120  }
  0x4c   :  { %348 = vmatprep.mubr.f32.mxu0 %v584_v0  ;;  %408 = vmatpush3.msra.mxu1 %v79_v1  ;;  %v424_v6 = vpack.c.bf16 %v165_v4, %v164_v3  ;;  %v166_v7 = vld [vmem:[#allocation7 + $0x10] sm:$0xff]  ;;  %v167_v8 = vld [vmem:[#allocation7 + $0x18] sm:$0xff]  ;;  %v253_v10 = vld [vmem:[#allocation8 + $0x8] sm:$0xff]  ;;  %vm280_vm5 = vcmask 523264   ;;  %v271_v47 = vshrl.u32 %v270_v46, 7 }
  0x4d   :  { %410 = vmatmul.mubr.msk.f32.vlgmr.msra.gmra.mrb[0].mxu1 %vm87_vm1, %v78_v2  ;;  %423 = vmatprep.subr.bf16.mxu1 %v586_v5  ;;  %v427_v9 = vpack.c.bf16 %v167_v8, %v166_v7  ;;  %v255_v11 = vld [vmem:[#allocation8 + $0x18] sm:$0xff]  ;;  %v252_v12 = vld [vmem:[#allocation8] sm:$0xff]  ;;  %v254_v14 = vld [vmem:[#allocation8 + $0x10] sm:$0xff]  ;;  %v587_v51 = vmov 1966171168  }
  0x4e   :  { %420 = vmatprep.mubr.msk.f32.mxu1 %vm585_vm0, %v584_v0  ;;  %425 = vmatpush3.bf16.msra.mxu1 %v424_v6  ;;  %v429_v13 = vpack.c.bf16 %v255_v11, %v253_v10  ;;  %v257_v15 = vld [vmem:[#allocation8 + $0x28] sm:$0xff]  ;;  %v259_v16 = vld [vmem:[#allocation8 + $0x38] sm:$0xff]  ;;  %v431_v17 = vpack.c.bf16 %v254_v14, %v252_v12  ;;  %v256_v19 = vld [vmem:[#allocation8 + $0x20] sm:$0xff]  ;;  %v272_v48 = vsub.s32 0, %v271_v47  ;;  %v276_v50 = vsub.s32 1, %v271_v47 }
  0x4f   :  { %426 = vmatprep.subr.bf16.mxu1 %v586_v5  ;;  %v433_v18 = vpack.c.bf16 %v259_v16, %v257_v15  ;;  %v258_v20 = vld [vmem:[#allocation8 + $0x30] sm:$0xff]  ;;  %v261_v21 = vld [vmem:[#allocation8 + $0x48] sm:$0xff]  ;;  %v263_v22 = vld [vmem:[#allocation8 + $0x58] sm:$0xff]  ;;  %v361_v52 = vunpack.c.l.s4 %v587_v51 }
  0x50   :  { %430 = vmatprep.subr.bf16.mxu0 %v429_v13  ;;  %v435_v23 = vpack.c.bf16 %v258_v20, %v256_v19  ;;  %v437_v24 = vpack.c.bf16 %v263_v22, %v261_v21  ;;  %v260_v25 = vld [vmem:[#allocation8 + $0x40] sm:$0xff]  ;;  %v262_v26 = vld [vmem:[#allocation8 + $0x50] sm:$0xff]  ;;  %v265_v34 = vld [vmem:[#allocation8 + $0x68] sm:$0xff] }
  0x51   :  { %432 = vmatpush1.bf16.msra.mxu0 %v431_v17  ;;  %v439_v27 = vpack.c.bf16 %v262_v26, %v260_v25  ;;  %v393_v28 = vld [vmem:[%s700_s2] ss:$0 sm:$0xff]  ;;  %v267_v35 = vld [vmem:[#allocation8 + $0x78] sm:$0xff]  ;;  %v264_v37 = vld [vmem:[#allocation8 + $0x60] sm:$0xff]  ;;  %v362_v55 = vunpack.c.0.s8 %v361_v52 }
  0x52   :  { %428 = vmatpush3.bf16.msra.mxu1 %v427_v9  ;;  %434 = vmatprep.subr.bf16.mxu0 %v433_v18  ;;  %v441_v36 = vpack.c.bf16 %v267_v35, %v265_v34  ;;  %v266_v38 = vld [vmem:[#allocation8 + $0x70] sm:$0xff] }
  0x53   :  { %v443_v39 = vpack.c.bf16 %v266_v38, %v264_v37  ;;  %v395_v40 = vld [vmem:[%s702_s4] ss:$0 sm:$0xff]  ;;  %v365_v60 = vsub.s32 %v362_v55, %v271_v47  ;;  %s588_s4 = smov [#allocation10]  }
  0x54   :  { %v268_v49 = vld [vmem:[%s704_s6] sm:$0x3]  ;;  %s382_s8 = sshll.u32 %s588_s4, 4  ;;  %s383_s8 = int_to_ptr.vmem [resolvable:$true] %s382_s8 }
  0x55   :  { %436 = vmatpush1.bf16.msra.mxu0 %v435_v23  ;;  %v273_v53 = vrot.slane %v268_v49, %v272_v48  ;;  %v277_v54 = vrot.slane %v268_v49, %v276_v50  ;;  %s546_s9 = scalar_lea.vmem %s383_s8, 32  ;;  %p551_p5 = scmp.lt.s32.totalorder %s383_s8, %s383_s8 }
  0x56   :  { %438 = vmatprep.subr.bf16.mxu0 %v437_v24  ;;  %p547_p4 = scmp.ne.s32.totalorder %s383_s8, %s546_s9  ;;  %p552_p6 = scmp.lt.s32.totalorder %s546_s9, %s546_s9 }
  0x58   :  { %p553_p7 = por %p552_p6, %p551_p5 }
  0x59   :  { %440 = vmatpush1.bf16.msra.mxu0 %v439_v27 }
  0x5a   :  { %442 = vmatprep.subr.bf16.mxu0 %v441_v36  ;;  %p554_p8 = pnand %p553_p7, %p547_p4 }
  0x5d   :  { %444 = vmatpush1.bf16.msra.mxu0 %v443_v39 }
 0x120   :  { %v157_v29 = vpop.f32.mrb[0].mxu1 }
 0x121   :  { %v158_v30 = vadd.f32 %v393_v28, %v157_v29  ;;  %v411_v31 = vpop.f32.mrb[1].mxu1 }
 0x123   :  { %vm161_vm2 = vcmp.gt.f32.partialorder %v158_v30, 0.0  ;;  %v162_v32 = vmul.f32 0.01, %v158_v30 }
 0x125   :  { %v163_v33 = vsel %vm161_vm2, %v158_v30, %v162_v32 }
 0x126   :  { %421 = vmatmul.mubr.msk.f32.vlgmr.msra.gmra.mrb[2].mxu1 %vm175_vm3, %v163_v33 }
 0x1f9   :  { %v245_v41 = vpop.f32.mrb[2].mxu1 }
 0x1fa   :  { %v246_v42 = vadd.f32 %v395_v40, %v245_v41  ;;  %v422_v43 = vpop.f32.mrb[3].mxu1 }
 0x1fc   :  { %vm249_vm4 = vcmp.gt.f32.partialorder %v246_v42, 0.0  ;;  %v250_v44 = vmul.f32 0.01, %v246_v42 }
 0x1fe   :  { %v251_v45 = vsel %vm249_vm4, %v246_v42, %v250_v44 }
 0x1ff   :  { %397 = vmatmul.mubr.msk.f32.vlgmr.msra.gmra.mrb[0].mxu0 %vm280_vm5, %v251_v45 }
 0x2d2   :  { %v350_v56 = vpop.f32.mrb[0].mxu0 }
 0x2d3   :  { %v351_v57 = vadd.f32 %v350_v56, %v273_v53  ;;  %v352_v58 = vpop.f32.mrb[1].mxu0 }
 0x2d4   :  { %v353_v59 = vadd.f32 %v352_v58, %v277_v54 }
 0x2d6   :  { %v398_v61 = vpack.c.bf16 %v353_v59, %v351_v57 }
 0x2d8   :  { %v366_v62 = vrot.slane %v398_v61, %v365_v60 }
 0x2da   :  { %399 = vst.sshfl [vmem:[#allocation10] sm:$0x5 pattern:$0x73625140] %v366_v62 }
 0x2db   :  { %557 = shalt.err (!%p554_p8)
}
 0x2dc   :  { %s558_s11 = scalar_lea.hbm %s705_s7, 32 }
 0x2dd   :  { %p559_p9 = scmp.ne.s32.totalorder %s705_s7, %s558_s11  ;;  %p562_p10 = scmp.lt.u32.totalorder %s558_s11, %s705_s7 }
 0x2df   :  { %p564_p11 = pnand %p562_p10, %p559_p9 }
 0x2e1   :  { %567 = shalt.err (!%p564_p11)
}
 0x2e2   :  { %385 = dma.vmem_to_hbm [thread:$0]  %s383_s8, 32, %s705_s7, [#allocation4]  }
 0x2e3   :  { %574 = dma.done.wait [#allocation4], 32  }
 0x2e4   :  { %575 = vsyncadd [#allocation4], 4294967264 }
 0x2e5   :  { %389 = vsyncpa [#allocation3], 1 }
 0x2e6   :  { %390 = vsyncpa [#allocation6], 1 }
 0x2e7   :  { %391 = vsyncpa [#allocation9], 1 }
 0x2e8   :  { %392 = vsyncpa [#allocation4], 1 }

</bundles_post_ra>
